<compile_context>
chip_gen: v7x
topology: tpu7x:2x2x1
jax: 0.10.0
libtpu: 0.0.40
codegen_flags: <defaults>
</compile_context>

<pallas_src>
import jax
import jax.numpy as jnp
from jax.experimental import pallas as pl
from jax.experimental.pallas import tpu as pltpu

_LANES = 128
_SUBLANES = 8


def _round_up(a, b):
    return (a + b - 1) // b * b


def _is_multicore_chip():
    # v7x has 2 TensorCores per chip; v5e/v6e have 1.  Conservative fallback.
    try:
        kind = jax.devices()[0].device_kind.lower()
    except Exception:
        return False
    return "v7" in kind


def _pick_batch_tile(B, N, C, in_itemsize, multicore):
    """Rows-per-step tile for the batch axis, from VMEM + per-step HBM targets."""
    n_pad = _round_up(N, _SUBLANES)
    c_pad = _round_up(C, _LANES)
    # VMEM bytes per batch row in the padded (8,128) layout: input + f32 output.
    row_vmem = n_pad * c_pad * in_itemsize + c_pad * 4
    row_hbm = max(N * C * in_itemsize, 1)  # real HBM bytes read per batch row

    # Keep the double-buffered block footprint well under physical VMEM
    # (v7x has only 64 MiB per TensorCore).
    vmem_block_budget = (32 << 20) if multicore else (24 << 20)
    tb_vmem = max(_SUBLANES,
                  (vmem_block_budget // (2 * row_vmem)) // _SUBLANES * _SUBLANES)

    # Amortize the ~0.35us fixed per-grid-step cost; v7x streams ~3x faster so
    # it needs a bigger per-step slab to stay >90% efficient.
    target_step_bytes = (16 << 20) if multicore else (4 << 20)
    tb_hbm = max(_SUBLANES,
                 (target_step_bytes // row_hbm) // _SUBLANES * _SUBLANES)

    tb = min(tb_vmem, tb_hbm)

    if tb >= B:
        # Whole batch fits in one step.  Only split for the 2-TensorCore
        # generations (single-TC v5e/v6e gain nothing from an extra step).
        if multicore and B >= 2 * _SUBLANES:
            tb_split = _round_up(pl.cdiv(B, 2), _SUBLANES)
            if tb_split < B:
                return tb_split, pl.cdiv(B, tb_split)
        return B, 1

    # Balanced tiling so the ragged last tile is small (no jnp.pad pre-pass;
    # Pallas masks the out-of-range rows of the boundary block).
    num_tiles = pl.cdiv(B, tb)
    tb = _round_up(pl.cdiv(B, num_tiles), _SUBLANES)
    return tb, pl.cdiv(B, tb)


def stacker_kernel(w_ref, x_ref, o_ref):
    # w_ref: SMEM (N,)        softmax(alpha) weights (scalar-prefetched)
    # x_ref: VMEM (TB, N, C)  native-layout tile of base-model probabilities
    # o_ref: VMEM (TB, C)     tile of log ensemble probabilities
    n_models = x_ref.shape[1]
    acc = x_ref[:, 0, :].astype(jnp.float32) * w_ref[0]
    # TODO(synk): for N >~ 16, chunk this with lax.fori_loop(unroll=True) over
    # sub-rows so the accumulator stays vreg-resident instead of chaining
    # full-tile temporaries (neutral for small N, kernel is HBM-bound).
    for n in range(1, n_models):  # static N -> unrolled VPU mul-adds
        acc = acc + x_ref[:, n, :].astype(jnp.float32) * w_ref[n]
    o_ref[...] = jnp.log(acc)  # EUP


@jax.jit
def stacker_forward(alpha, x):
    """alpha: (1, N); x: (B, N, C) probabilities -> (B, C) float32 log-probs."""
    B, N, C = x.shape
    assert alpha.shape == (1, N)

    # Hoisted parameter softmax (tiny (1, N) op) -> SMEM via scalar prefetch.
    w = jax.nn.softmax(alpha.astype(jnp.float32), axis=1).reshape(N)

    multicore = _is_multicore_chip()
    in_itemsize = jnp.dtype(x.dtype).itemsize
    tb, num_tiles = _pick_batch_tile(B, N, C, in_itemsize, multicore)

    # Right-size the VMEM limit from the actual double-buffered block footprint
    # (padded (8,128) layout) plus slack for Mosaic internal scratch.
    n_pad = _round_up(N, _SUBLANES)
    c_pad = _round_up(C, _LANES)
    block_vmem = 2 * tb * (n_pad * c_pad * in_itemsize + c_pad * 4)
    vmem_limit = max(block_vmem + (8 << 20), 16 << 20)

    return pl.pallas_call(
        stacker_kernel,
        out_shape=jax.ShapeDtypeStruct((B, C), jnp.float32),
        grid_spec=pltpu.PrefetchScalarGridSpec(
            num_scalar_prefetch=1,                                   # w -> SMEM
            grid=(num_tiles,),
            in_specs=[pl.BlockSpec((tb, N, C), lambda i, w_s: (i, 0, 0))],
            out_specs=pl.BlockSpec((tb, C), lambda i, w_s: (i, 0)),
        ),
        compiler_params=pltpu.CompilerParams(
            dimension_semantics=("parallel",),
            vmem_limit_bytes=vmem_limit,
        ),
    )(w, x)


if __name__ == "__main__":
    # Small shapes: B=16 stacked examples, N=4 base models, C=16 classes.
    B, N, C = 16, 4, 16

    # Deterministic parameter init, matching nn.Parameter(torch.ones(1, N)).
    alpha = jnp.ones((1, N), dtype=jnp.float32)

    # Deterministic synthetic input: per-model probability distributions
    # (softmax over the class axis so log() is well-defined).
    key = jax.random.PRNGKey(0)
    logits = jax.random.normal(key, (B, N, C), dtype=jnp.float32)
    x = jax.nn.softmax(logits, axis=-1)

    out = jax.block_until_ready(stacker_forward(alpha, x))

    # Reference check in plain JAX (same semantics as the PyTorch module).
    w_ref = jax.nn.softmax(alpha, axis=1)                     # (1, N)
    ref = jnp.log(jnp.einsum("on,bnc->bc", w_ref, x))         # (B, C)
    assert out.shape == (B, C)
    assert jnp.allclose(out, ref, atol=1e-5, rtol=1e-5)

    print("KERNEL_OK")
</pallas_src>

<mosaic_0001>
module attributes {stable_mosaic.version = 11 : i64} {
  func.func @stacker_kernel(%arg0: i32, %arg1: memref<4xf32, #tpu.memory_space<smem>>, %arg2: memref<16x4x16xf32, #tpu.memory_space<vmem>>, %arg3: memref<16x16xf32, #tpu.memory_space<vmem>>) attributes {dimension_semantics = [#tpu.dimension_semantics<parallel>], iteration_bounds = array<i64: 1>, scalar_prefetch = 1 : i64, scratch_operands = 0 : i64, tpu.core_type = #tpu.core_type<tc>, window_params = [{transform_indices = @transform_0, window_bounds = array<i64: 16, 4, 16>}, {transform_indices = @transform_1, window_bounds = array<i64: 16, 16>}]} {
    %c0 = arith.constant 0 : index
    %c0_0 = arith.constant 0 : index
    %c0_1 = arith.constant 0 : index
    %0 = vector.load %arg2[%c0, %c0_0, %c0_1] : memref<16x4x16xf32, #tpu.memory_space<vmem>>, vector<16x1x16xf32>
    %1 = vector.shape_cast %0 : vector<16x1x16xf32> to vector<16x16xf32>
    %c0_2 = arith.constant 0 : index
    %2 = memref.load %arg1[%c0_2] : memref<4xf32, #tpu.memory_space<smem>>
    %3 = vector.broadcast %2 : f32 to vector<16x16xf32>
    %4 = arith.mulf %1, %3 : vector<16x16xf32>
    %c0_3 = arith.constant 0 : index
    %c1 = arith.constant 1 : index
    %c0_4 = arith.constant 0 : index
    %5 = vector.load %arg2[%c0_3, %c1, %c0_4] : memref<16x4x16xf32, #tpu.memory_space<vmem>>, vector<16x1x16xf32>
    %6 = vector.shape_cast %5 : vector<16x1x16xf32> to vector<16x16xf32>
    %c1_5 = arith.constant 1 : index
    %7 = memref.load %arg1[%c1_5] : memref<4xf32, #tpu.memory_space<smem>>
    %8 = vector.broadcast %7 : f32 to vector<16x16xf32>
    %9 = arith.mulf %6, %8 : vector<16x16xf32>
    %10 = arith.addf %4, %9 : vector<16x16xf32>
    %c0_6 = arith.constant 0 : index
    %c2 = arith.constant 2 : index
    %c0_7 = arith.constant 0 : index
    %11 = vector.load %arg2[%c0_6, %c2, %c0_7] : memref<16x4x16xf32, #tpu.memory_space<vmem>>, vector<16x1x16xf32>
    %12 = vector.shape_cast %11 : vector<16x1x16xf32> to vector<16x16xf32>
    %c2_8 = arith.constant 2 : index
    %13 = memref.load %arg1[%c2_8] : memref<4xf32, #tpu.memory_space<smem>>
    %14 = vector.broadcast %13 : f32 to vector<16x16xf32>
    %15 = arith.mulf %12, %14 : vector<16x16xf32>
    %16 = arith.addf %10, %15 : vector<16x16xf32>
    %c0_9 = arith.constant 0 : index
    %c3 = arith.constant 3 : index
    %c0_10 = arith.constant 0 : index
    %17 = vector.load %arg2[%c0_9, %c3, %c0_10] : memref<16x4x16xf32, #tpu.memory_space<vmem>>, vector<16x1x16xf32>
    %18 = vector.shape_cast %17 : vector<16x1x16xf32> to vector<16x16xf32>
    %c3_11 = arith.constant 3 : index
    %19 = memref.load %arg1[%c3_11] : memref<4xf32, #tpu.memory_space<smem>>
    %20 = vector.broadcast %19 : f32 to vector<16x16xf32>
    %21 = arith.mulf %18, %20 : vector<16x16xf32>
    %22 = arith.addf %16, %21 : vector<16x16xf32>
    %23 = math.log %22 : vector<16x16xf32>
    %c0_12 = arith.constant 0 : index
    %c0_13 = arith.constant 0 : index
    %24 = vector.load %arg3[%c0_12, %c0_13] : memref<16x16xf32, #tpu.memory_space<vmem>>, vector<16x16xf32>
    tpu.vector_store %arg3[%c0_12, %c0_13], %23 {strides = array<i32>} : memref<16x16xf32, #tpu.memory_space<vmem>>, vector<16x16xf32>,
    return
  }
  func.func @transform_0(%arg0: i32, %arg1: memref<4xf32, #tpu.memory_space<smem>>) -> (i32, i32, i32) {
    %c0_i32 = arith.constant 0 : i32
    %c0_i32_0 = arith.constant 0 : i32
    %c0_i32_1 = arith.constant 0 : i32
    return %arg0, %c0_i32, %c0_i32_0 : i32, i32, i32
  }
  func.func @transform_1(%arg0: i32, %arg1: memref<4xf32, #tpu.memory_space<smem>>) -> (i32, i32) {
    %c0_i32 = arith.constant 0 : i32
    %c0_i32_0 = arith.constant 0 : i32
    return %arg0, %c0_i32 : i32, i32
  }
}

</mosaic_0001>

<bundles_post_ra>
// kernel: stacker_forward.1
= control target key start
LH: loop header
LB: loop body
LE: loop exit
PB: predicated region body
PF: predicated region fallthrough
CT: control target
= control target key end

     0   :  { %s554_s0 = inlined_call_operand.vmem [shape: f32[4], index: 0, kind: input, shape index: {}]   ;;  %s555_s1 = inlined_call_operand.hbm [shape: f32[16,4,16], index: 1, kind: input, shape index: {}]   ;;  %s556_s2 = inlined_call_operand.hbm [shape: f32[16,16], index: 2, kind: output, shape index: {}]  }
   0x1   :  { %s7_s11 = sshll.u32 %s554_s0, 4  ;;  %s8_s11 = int_to_ptr.vmem [resolvable:$true] %s7_s11 }
   0x2   :  { %s361_s12 = scalar_lea.vmem %s8_s11, 16  ;;  %p366_p1 = scmp.lt.s32.totalorder %s8_s11, %s8_s11 }
   0x3   :  { %p362_p0 = scmp.ne.s32.totalorder %s8_s11, %s361_s12  ;;  %p367_p2 = scmp.lt.s32.totalorder %s361_s12, %s361_s12 }
   0x5   :  { %p368_p3 = por %p367_p2, %p366_p1 }
   0x7   :  { %p369_p4 = pnand %p368_p3, %p362_p0 }
   0x9   :  { %372 = shalt.err (!%p369_p4)  }
   0xa   :  { %s423_s13 = smov [#allocation3]  }
   0xb   :  { %10 = dma.vmem_to_smem %s8_s11, 16, %s423_s13, [#allocation2] }
   0xc   :  { %417 = dma.done.wait [#allocation2], 16 }
   0xd   :  { %418 = vsyncadd [#allocation2], 4294967280 }
   0xe   :  { %12 = sfence }
   0xf   :  { %13 = vsyncpa [#allocation5], 0 }
  0x10   :  { %14 = vsyncpa [#allocation6], 0  ;;  %s424_s14 = smov [#allocation4]   ;;  %s373_s17 = scalar_lea.hbm %s555_s1, 1024 }
  0x11   :  { %s20_s15 = sshll.u32 %s424_s14, 4  ;;  %p374_p5 = scmp.ne.s32.totalorder %s555_s1, %s373_s17  ;;  %s21_s15 = int_to_ptr.vmem [resolvable:$true] %s20_s15 }
  0x12   :  { %p377_p6 = scmp.lt.u32.totalorder %s373_s17, %s555_s1 }
  0x14   :  { %p379_p7 = pnand %p377_p6, %p374_p5 }
  0x16   :  { %382 = shalt.err (!%p379_p7)
}
  0x17   :  { %s383_s22 = scalar_lea.vmem %s21_s15, 1024  ;;  %p388_p9 = scmp.lt.s32.totalorder %s21_s15, %s21_s15 }
  0x18   :  { %p384_p8 = scmp.ne.s32.totalorder %s21_s15, %s383_s22  ;;  %p389_p10 = scmp.lt.s32.totalorder %s383_s22, %s383_s22 }
  0x1a   :  { %p390_p11 = por %p389_p10, %p388_p9 }
  0x1c   :  { %p391_p12 = pnand %p390_p11, %p384_p8 }
  0x1e   :  { %394 = shalt.err (!%p391_p12)
}
  0x1f   :  { %s425_s23 = smov 64   ;;  %s426_s24 = smov 4  }
  0x20   :  { %26 = dma.hbm_to_vmem [thread:$0]  %s555_s1, 1024, %s21_s15, [#allocation5], %s425_s23, %s425_s23, %s426_s24  }
  0x21   :  { %419 = dma.done.wait [#allocation5], 1024  }
  0x22   :  { %420 = vsyncadd [#allocation5], 4294966272  ;;  %s46_s27 = sld [smem:[#allocation3]]  ;;  %s319_s28 = sld [smem:[#allocation3 + $0x1]]  ;;  %v30_v0 = vld [vmem:[#allocation4] sm:$0x1] }
  0x23   :  { %s320_s29 = sld [smem:[#allocation3 + $0x2]]  ;;  %s460_s30 = sld [smem:[#allocation3 + $0x3]]  ;;  %v31_v1 = vld [vmem:[#allocation4 + $0x4] sm:$0x1]  ;;  %v32_v2 = vld [vmem:[#allocation4 + $0x8] sm:$0x1] }
  0x24   :  { %v33_v3 = vld [vmem:[#allocation4 + $0xc] sm:$0x1]  ;;  %v34_v4 = vld [vmem:[#allocation4 + $0x10] sm:$0x1]  ;;  %v35_v5 = vld [vmem:[#allocation4 + $0x14] sm:$0x1] }
  0x25   :  { %v36_v7 = vld [vmem:[#allocation4 + $0x18] sm:$0x1]  ;;  %v37_v8 = vld [vmem:[#allocation4 + $0x1c] sm:$0x1]  ;;  %v38_v9 = vld [vmem:[#allocation4 + $0x20] sm:$0x1] }
  0x26   :  { %v39_v10 = vld [vmem:[#allocation4 + $0x24] sm:$0x1]  ;;  %v40_v11 = vld [vmem:[#allocation4 + $0x28] sm:$0x1]  ;;  %v41_v12 = vld [vmem:[#allocation4 + $0x2c] sm:$0x1] }
  0x27   :  { %v42_v13 = vld [vmem:[#allocation4 + $0x30] sm:$0x1]  ;;  %v43_v14 = vld [vmem:[#allocation4 + $0x34] sm:$0x1]  ;;  %v64_v17 = vld [vmem:[#allocation4 + $0x1] sm:$0x1] }
  0x28   :  { %v47_v6 = vstv %s46_s27  ;;  %v81_v18 = vstv %s319_s28  ;;  %v44_v19 = vld [vmem:[#allocation4 + $0x38] sm:$0x1]  ;;  %v45_v20 = vld [vmem:[#allocation4 + $0x3c] sm:$0x1]  ;;  %v65_v24 = vld [vmem:[#allocation4 + $0x5] sm:$0x1] }
  0x29   :  { %v48_v15 = vmul.f32 %v47_v6, %v30_v0  ;;  %v49_v16 = vmul.f32 %v47_v6, %v31_v1  ;;  %v50_v21 = vmul.f32 %v47_v6, %v32_v2  ;;  %v51_v22 = vmul.f32 %v47_v6, %v33_v3  ;;  %v66_v29 = vld [vmem:[#allocation4 + $0x9] sm:$0x1]  ;;  %v67_v30 = vld [vmem:[#allocation4 + $0xd] sm:$0x1]  ;;  %v68_v31 = vld [vmem:[#allocation4 + $0x11] sm:$0x1] }
  0x2a   :  { %v52_v23 = vmul.f32 %v47_v6, %v34_v4  ;;  %v462_v25 = vstv %s320_s29  ;;  %v53_v26 = vmul.f32 %v47_v6, %v35_v5  ;;  %v54_v27 = vmul.f32 %v47_v6, %v36_v7  ;;  %v69_v36 = vld [vmem:[#allocation4 + $0x15] sm:$0x1]  ;;  %v70_v37 = vld [vmem:[#allocation4 + $0x19] sm:$0x1]  ;;  %v71_v38 = vld [vmem:[#allocation4 + $0x1d] sm:$0x1] }
  0x2b   :  { %v55_v28 = vmul.f32 %v47_v6, %v37_v8  ;;  %v465_v32 = vstv %s460_s30  ;;  %v56_v33 = vmul.f32 %v47_v6, %v38_v9  ;;  %v57_v34 = vmul.f32 %v47_v6, %v39_v10  ;;  %v72_v43 = vld [vmem:[#allocation4 + $0x21] sm:$0x1]  ;;  %v73_v44 = vld [vmem:[#allocation4 + $0x25] sm:$0x1]  ;;  %v74_v45 = vld [vmem:[#allocation4 + $0x29] sm:$0x1] }
  0x2c   :  { %v58_v35 = vmul.f32 %v47_v6, %v40_v11  ;;  %v82_v39 = vmul.f32 %v81_v18, %v64_v17  ;;  %v59_v40 = vmul.f32 %v47_v6, %v41_v12  ;;  %v60_v41 = vmul.f32 %v47_v6, %v42_v13  ;;  %v75_v49 = vld [vmem:[#allocation4 + $0x2d] sm:$0x1]  ;;  %v76_v50 = vld [vmem:[#allocation4 + $0x31] sm:$0x1]  ;;  %v77_v51 = vld [vmem:[#allocation4 + $0x35] sm:$0x1] }
  0x2d   :  { %v61_v42 = vmul.f32 %v47_v6, %v43_v14  ;;  %v83_v46 = vmul.f32 %v81_v18, %v65_v24  ;;  %v62_v47 = vmul.f32 %v47_v6, %v44_v19  ;;  %v63_v48 = vmul.f32 %v47_v6, %v45_v20  ;;  %v78_v54 = vld [vmem:[#allocation4 + $0x39] sm:$0x1]  ;;  %v79_v55 = vld [vmem:[#allocation4 + $0x3d] sm:$0x1]  ;;  %v114_v0 = vld [vmem:[#allocation4 + $0x2] sm:$0x1] }
  0x2e   :  { %v84_v52 = vmul.f32 %v81_v18, %v66_v29  ;;  %v85_v53 = vmul.f32 %v81_v18, %v67_v30  ;;  %v86_v56 = vmul.f32 %v81_v18, %v68_v31  ;;  %v87_v57 = vmul.f32 %v81_v18, %v69_v36  ;;  %v115_v5 = vld [vmem:[#allocation4 + $0x6] sm:$0x1]  ;;  %v116_v10 = vld [vmem:[#allocation4 + $0xa] sm:$0x1]  ;;  %v117_v14 = vld [vmem:[#allocation4 + $0xe] sm:$0x1] }
  0x2f   :  { %v88_v58 = vmul.f32 %v81_v18, %v70_v37  ;;  %v89_v59 = vmul.f32 %v81_v18, %v71_v38  ;;  %v90_v60 = vmul.f32 %v81_v18, %v72_v43  ;;  %v91_v61 = vmul.f32 %v81_v18, %v73_v44  ;;  %v118_v24 = vld [vmem:[#allocation4 + $0x12] sm:$0x1]  ;;  %v165_v30 = vld [vmem:[#allocation4 + $0x7] sm:$0x1]  ;;  %v122_v36 = vld [vmem:[#allocation4 + $0x22] sm:$0x1] }
  0x30   :  { %v92_v62 = vmul.f32 %v81_v18, %v74_v45  ;;  %v98_v63 = vadd.f32 %v82_v39, %v48_v15  ;;  %v93_v1 = vmul.f32 %v81_v18, %v75_v49  ;;  %v94_v2 = vmul.f32 %v81_v18, %v76_v50  ;;  %v123_v37 = vld [vmem:[#allocation4 + $0x26] sm:$0x1]  ;;  %v166_v38 = vld [vmem:[#allocation4 + $0xb] sm:$0x1]  ;;  %v124_v39 = vld [vmem:[#allocation4 + $0x2a] sm:$0x1] }
  0x31   :  { %v95_v3 = vmul.f32 %v81_v18, %v77_v51  ;;  %v99_v4 = vadd.f32 %v83_v46, %v49_v16  ;;  %v96_v6 = vmul.f32 %v81_v18, %v78_v54  ;;  %v97_v7 = vmul.f32 %v81_v18, %v79_v55  ;;  %v119_v16 = vld [vmem:[#allocation4 + $0x16] sm:$0x1]  ;;  %v164_v18 = vld [vmem:[#allocation4 + $0x3] sm:$0x1]  ;;  %v167_v45 = vld [vmem:[#allocation4 + $0xf] sm:$0x1] }
  0x32   :  { %v100_v8 = vadd.f32 %v84_v52, %v50_v21  ;;  %v101_v9 = vadd.f32 %v85_v53, %v51_v22  ;;  %v102_v11 = vadd.f32 %v86_v56, %v52_v23  ;;  %v103_v12 = vadd.f32 %v87_v57, %v53_v26  ;;  %v120_v26 = vld [vmem:[#allocation4 + $0x1a] sm:$0x1]  ;;  %v126_v46 = vld [vmem:[#allocation4 + $0x32] sm:$0x1]  ;;  %v168_v50 = vld [vmem:[#allocation4 + $0x13] sm:$0x1] }
  0x33   :  { %v104_v13 = vadd.f32 %v88_v58, %v54_v27  ;;  %v132_v17 = vmul.f32 %v462_v25, %v114_v0  ;;  %v468_v19 = vadd.f32 %v89_v59, %v55_v28  ;;  %v470_v15 = vadd.f32 %v90_v60, %v56_v33  ;;  %v121_v27 = vld [vmem:[#allocation4 + $0x1e] sm:$0x1]  ;;  %v127_v52 = vld [vmem:[#allocation4 + $0x36] sm:$0x1]  ;;  %v169_v56 = vld [vmem:[#allocation4 + $0x17] sm:$0x1] }
  0x34   :  { %v472_v20 = vadd.f32 %v91_v61, %v57_v34  ;;  %v133_v29 = vmul.f32 %v462_v25, %v115_v5  ;;  %v475_v21 = vadd.f32 %v92_v62, %v58_v35  ;;  %v477_v22 = vadd.f32 %v93_v1, %v59_v40  ;;  %v125_v40 = vld [vmem:[#allocation4 + $0x2e] sm:$0x1]  ;;  %v128_v58 = vld [vmem:[#allocation4 + $0x3a] sm:$0x1]  ;;  %v170_v62 = vld [vmem:[#allocation4 + $0x1b] sm:$0x1] }
  0x35   :  { %v479_v23 = vadd.f32 %v94_v2, %v60_v41  ;;  %v134_v28 = vmul.f32 %v462_v25, %v116_v10  ;;  %v482_v31 = vadd.f32 %v95_v3, %v61_v42  ;;  %v484_v33 = vadd.f32 %v96_v6, %v62_v47  ;;  %v129_v0 = vld [vmem:[#allocation4 + $0x3e] sm:$0x1]  ;;  %v171_v3 = vld [vmem:[#allocation4 + $0x1f] sm:$0x1]  ;;  %s427_s1 = smov [#allocation7]  }
  0x36   :  { %v486_v34 = vadd.f32 %v97_v7, %v63_v48  ;;  %v135_v35 = vmul.f32 %v462_v25, %v117_v14  ;;  %v136_v41 = vmul.f32 %v462_v25, %v118_v24  ;;  %v137_v43 = vmul.f32 %v462_v25, %v119_v16  ;;  %v173_v24 = vld [vmem:[#allocation4 + $0x27] sm:$0x1]  ;;  %s307_s3 = sshll.u32 %s427_s1, 4  ;;  %s308_s3 = int_to_ptr.vmem [resolvable:$true] %s307_s3 }
  0x37   :  { %v148_v44 = vadd.f32 %v132_v17, %v98_v63  ;;  %v182_v42 = vmul.f32 %v465_v32, %v164_v18  ;;  %v138_v47 = vmul.f32 %v462_v25, %v120_v26  ;;  %v139_v48 = vmul.f32 %v462_v25, %v121_v27  ;;  %v174_v26 = vld [vmem:[#allocation4 + $0x2b] sm:$0x1]  ;;  %s395_s4 = scalar_lea.vmem %s308_s3, 256  ;;  %p400_p0 = scmp.lt.s32.totalorder %s308_s3, %s308_s3 }
  0x38   :  { %v149_v49 = vadd.f32 %v133_v29, %v99_v4  ;;  %v183_v51 = vmul.f32 %v465_v32, %v165_v30  ;;  %v140_v53 = vmul.f32 %v462_v25, %v122_v36  ;;  %v141_v54 = vmul.f32 %v462_v25, %v123_v37  ;;  %v175_v30 = vld [vmem:[#allocation4 + $0x2f] sm:$0x1]  ;;  %p396_p13 = scmp.ne.s32.totalorder %s308_s3, %s395_s4  ;;  %p401_p1 = scmp.lt.s32.totalorder %s395_s4, %s395_s4 }
  0x39   :  { %v150_v55 = vadd.f32 %v134_v28, %v100_v8  ;;  %v184_v57 = vmul.f32 %v465_v32, %v166_v38  ;;  %v142_v59 = vmul.f32 %v462_v25, %v124_v39  ;;  %v143_v60 = vmul.f32 %v462_v25, %v125_v40  ;;  %v172_v8 = vld [vmem:[#allocation4 + $0x23] sm:$0x1] }
  0x3a   :  { %v151_v61 = vadd.f32 %v135_v35, %v101_v9  ;;  %v185_v63 = vmul.f32 %v465_v32, %v167_v45  ;;  %v144_v1 = vmul.f32 %v462_v25, %v126_v46  ;;  %v152_v2 = vadd.f32 %v136_v41, %v102_v11  ;;  %v176_v35 = vld [vmem:[#allocation4 + $0x33] sm:$0x1]  ;;  %p402_p2 = por %p401_p1, %p400_p0 }
  0x3b   :  { %v186_v4 = vmul.f32 %v465_v32, %v168_v50  ;;  %v198_v5 = vadd.f32 %v182_v42, %v148_v44  ;;  %v145_v6 = vmul.f32 %v462_v25, %v127_v52  ;;  %v153_v7 = vadd.f32 %v137_v43, %v103_v12  ;;  %v178_v43 = vld [vmem:[#allocation4 + $0x3b] sm:$0x1]  ;;  %v179_v42 = vld [vmem:[#allocation4 + $0x3f] sm:$0x1] }
  0x3c   :  { %v187_v10 = vmul.f32 %v465_v32, %v169_v56  ;;  %v199_v14 = vadd.f32 %v183_v51, %v149_v49  ;;  %v146_v9 = vmul.f32 %v462_v25, %v128_v58  ;;  %v154_v17 = vadd.f32 %v138_v47, %v104_v13  ;;  %p403_p3 = pnand %p402_p2, %p396_p13 }
  0x3d   :  { %v188_v16 = vmul.f32 %v465_v32, %v170_v62  ;;  %v200_v29 = vadd.f32 %v184_v57, %v150_v55  ;;  %v147_v11 = vmul.f32 %v462_v25, %v129_v0  ;;  %v155_v18 = vadd.f32 %v139_v48, %v468_v19  ;;  %v177_v19 = vld [vmem:[#allocation4 + $0x37] sm:$0x1] }
  0x3e   :  { %v189_v27 = vmul.f32 %v465_v32, %v171_v3  ;;  %v201_v28 = vadd.f32 %v185_v63, %v151_v61  ;;  %v156_v12 = vadd.f32 %v140_v53, %v470_v15  ;;  %v190_v36 = vmul.f32 %v465_v32, %v172_v8 }
  0x3f   :  { %v202_v37 = vadd.f32 %v186_v4, %v152_v2  ;;  %329 = vlog2.f32 %v198_v5  ;;  %v157_v13 = vadd.f32 %v141_v54, %v472_v20  ;;  %v191_v38 = vmul.f32 %v465_v32, %v173_v24 }
  0x40   :  { %v203_v39 = vadd.f32 %v187_v10, %v153_v7  ;;  %331 = vlog2.f32 %v199_v14  ;;  %v158_v25 = vadd.f32 %v142_v59, %v475_v21  ;;  %v192_v40 = vmul.f32 %v465_v32, %v174_v26 }
  0x41   :  { %v204_v41 = vadd.f32 %v188_v16, %v154_v17  ;;  %333 = vlog2.f32 %v200_v29  ;;  %v159_v15 = vadd.f32 %v143_v60, %v477_v22  ;;  %v193_v44 = vmul.f32 %v465_v32, %v175_v30 }
  0x42   :  { %v205_v45 = vadd.f32 %v189_v27, %v155_v18  ;;  %335 = vlog2.f32 %v201_v28  ;;  %v160_v20 = vadd.f32 %v144_v1, %v479_v23  ;;  %v194_v46 = vmul.f32 %v465_v32, %v176_v35 }
  0x43   :  { %v206_v47 = vadd.f32 %v190_v36, %v156_v12  ;;  %337 = vlog2.f32 %v202_v37  ;;  %v161_v21 = vadd.f32 %v145_v6, %v482_v31  ;;  %v195_v48 = vmul.f32 %v465_v32, %v177_v19 }
  0x44   :  { %v207_v49 = vadd.f32 %v191_v38, %v157_v13  ;;  %339 = vlog2.f32 %v203_v39  ;;  %v162_v22 = vadd.f32 %v146_v9, %v484_v33  ;;  %v196_v50 = vmul.f32 %v465_v32, %v178_v43 }
  0x45   :  { %v208_v51 = vadd.f32 %v192_v40, %v158_v25  ;;  %341 = vlog2.f32 %v204_v41  ;;  %v163_v52 = vadd.f32 %v147_v11, %v486_v34  ;;  %v197_v23 = vmul.f32 %v465_v32, %v179_v42 }
  0x46   :  { %v209_v53 = vadd.f32 %v193_v44, %v159_v15  ;;  %343 = vlog2.f32 %v205_v45  ;;  %v210_v54 = vadd.f32 %v194_v46, %v160_v20  ;;  %v211_v55 = vadd.f32 %v195_v48, %v161_v21 }
  0x47   :  { %345 = vlog2.f32 %v206_v47  ;;  %v212_v56 = vadd.f32 %v196_v50, %v162_v22  ;;  %v213_v58 = vadd.f32 %v197_v23, %v163_v52  ;;  %vm263_vm0 = vcmask 1041409  }
  0x48   :  { %347 = vlog2.f32 %v207_v49  ;;  %vm266_vm1 = vcmask 1042434   ;;  %vm269_vm2 = vcmask 1043459   ;;  %vm272_vm3 = vcmask 1044484  }
  0x49   :  { %v330_v31 = vpop.eup %329  ;;  %349 = vlog2.f32 %v208_v51  ;;  %vm275_vm4 = vcmask 1045509   ;;  %vm278_vm5 = vcmask 1046534   ;;  %vm281_vm6 = vcmask 1047559  }
  0x4a   :  { %v332_v57 = vpop.eup %331  ;;  %351 = vlog2.f32 %v209_v53  ;;  %v215_v59 = vmul.f32 0.6931472, %v330_v31  ;;  %vm299_vm7 = vcmask 130048  }
  0x4b   :  { %v334_v33 = vpop.eup %333  ;;  %v217_v60 = vmul.f32 0.6931472, %v332_v57  ;;  %353 = vlog2.f32 %v210_v54 }
  0x4c   :  { %v336_v61 = vpop.eup %335  ;;  %v219_v34 = vmul.f32 0.6931472, %v334_v33  ;;  %355 = vlog2.f32 %v211_v55 }
  0x4d   :  { %v338_v32 = vpop.eup %337  ;;  %v221_v62 = vmul.f32 0.6931472, %v336_v61  ;;  %357 = vlog2.f32 %v212_v56  ;;  %v262_v63 = vrot.slane %v217_v60, 7 }
  0x4e   :  { %v340_v0 = vpop.eup %339  ;;  %v223_v1 = vmul.f32 0.6931472, %v338_v32  ;;  %359 = vlog2.f32 %v213_v58  ;;  %v265_v2 = vrot.slane %v219_v34, 6 }
  0x4f   :  { %v342_v3 = vpop.eup %341  ;;  %v225_v4 = vmul.f32 0.6931472, %v340_v0  ;;  %v264_v5 = vsel %vm263_vm0, %v262_v63, %v215_v59  ;;  %v268_v6 = vrot.slane %v221_v62, 5 }
  0x50   :  { %v344_v7 = vpop.eup %343  ;;  %v227_v8 = vmul.f32 0.6931472, %v342_v3  ;;  %v267_v10 = vsel %vm266_vm1, %v265_v2, %v264_v5  ;;  %v271_v14 = vrot.slane %v223_v1, 4 }
  0x51   :  { %v346_v9 = vpop.eup %345  ;;  %v229_v17 = vmul.f32 0.6931472, %v344_v7  ;;  %v270_v24 = vsel %vm269_vm2, %v268_v6, %v267_v10  ;;  %v274_v16 = vrot.slane %v225_v4, 3 }
  0x52   :  { %v348_v29 = vpop.eup %347  ;;  %v273_v11 = vsel %vm272_vm3, %v271_v14, %v270_v24  ;;  %v277_v18 = vrot.slane %v227_v8, 2  ;;  %v231_v27 = vmul.f32 0.6931472, %v346_v9 }
  0x53   :  { %v350_v26 = vpop.eup %349  ;;  %v233_v28 = vmul.f32 0.6931472, %v348_v29  ;;  %v276_v12 = vsel %vm275_vm4, %v274_v16, %v273_v11  ;;  %v280_v30 = vrot.slane %v229_v17, 1 }
  0x54   :  { %v352_v36 = vpop.eup %351  ;;  %v235_v37 = vmul.f32 0.6931472, %v350_v26  ;;  %v279_v13 = vsel %vm278_vm5, %v277_v18, %v276_v12 }
  0x55   :  { %v354_v35 = vpop.eup %353  ;;  %v237_v38 = vmul.f32 0.6931472, %v352_v36  ;;  %v282_v39 = vsel %vm281_vm6, %v280_v30, %v279_v13  ;;  %v283_v25 = vrot.slane %v233_v28, 7 }
  0x56   :  { %v356_v19 = vpop.eup %355  ;;  %v239_v40 = vmul.f32 0.6931472, %v354_v35  ;;  %v285_v41 = vrot.slane %v235_v37, 6  ;;  %300 = vst.msk [vmem:[#allocation7] sm:$0xff] %vm299_vm7, %v282_v39 }
  0x57   :  { %v358_v15 = vpop.eup %357  ;;  %v241_v43 = vmul.f32 0.6931472, %v356_v19  ;;  %v284_v44 = vsel %vm263_vm0, %v283_v25, %v231_v27  ;;  %v287_v45 = vrot.slane %v237_v38, 5 }
  0x58   :  { %v360_v20 = vpop.eup %359  ;;  %v243_v42 = vmul.f32 0.6931472, %v358_v15  ;;  %v286_v46 = vsel %vm266_vm1, %v285_v41, %v284_v44  ;;  %v289_v47 = vrot.slane %v239_v40, 4 }
  0x59   :  { %v245_v21 = vmul.f32 0.6931472, %v360_v20  ;;  %v288_v48 = vsel %vm269_vm2, %v287_v45, %v286_v46  ;;  %v291_v49 = vrot.slane %v241_v43, 3 }
  0x5a   :  { %v290_v22 = vsel %vm272_vm3, %v289_v47, %v288_v48  ;;  %v293_v50 = vrot.slane %v243_v42, 2 }
  0x5b   :  { %v292_v51 = vsel %vm275_vm4, %v291_v49, %v290_v22  ;;  %v295_v52 = vrot.slane %v245_v21, 1 }
  0x5c   :  { %v294_v23 = vsel %vm278_vm5, %v293_v50, %v292_v51 }
  0x5d   :  { %v296_v53 = vsel %vm281_vm6, %v295_v52, %v294_v23 }
  0x5e   :  { %301 = vst.msk [vmem:[#allocation7 + $0x8] sm:$0xff] %vm299_vm7, %v296_v53 }
  0x5f   :  { %406 = shalt.err (!%p403_p3)
}
  0x60   :  { %s407_s7 = scalar_lea.hbm %s556_s2, 256 }
  0x61   :  { %p408_p4 = scmp.ne.s32.totalorder %s556_s2, %s407_s7  ;;  %p411_p5 = scmp.lt.u32.totalorder %s407_s7, %s556_s2 }
  0x63   :  { %p413_p6 = pnand %p411_p5, %p408_p4 }
  0x65   :  { %416 = shalt.err (!%p413_p6)
}
  0x66   :  { %s428_s12 = smov 128   ;;  %s429_s13 = smov 8  }
  0x67   :  { %313 = dma.vmem_to_hbm [thread:$0]  %s308_s3, 256, %s556_s2, [#allocation6], %s428_s12, %s428_s12, %s429_s13  }
  0x68   :  { %421 = dma.done.wait [#allocation6], 256  }
  0x69   :  { %422 = vsyncadd [#allocation6], 4294967040 }
  0x6a   :  { %317 = vsyncpa [#allocation5], 1 }
  0x6b   :  { %318 = vsyncpa [#allocation6], 1 }

</bundles_post_ra>
